<compile_context>
chip_gen: v7x
topology: tpu7x:2x2x1
jax: 0.10.0
libtpu: 0.0.40
codegen_flags: <defaults>
</compile_context>

<pallas_src>
import functools
import math

import jax
import jax.numpy as jnp
from jax.experimental import pallas as pl
from jax.experimental.pallas import tpu as pltpu


def _round_up(n, m):
    return ((n + m - 1) // m) * m


def hfpa_kernel(x_ref, wu_ref, bu_ref, wd_ref, bd_ref, out_ref, *, precision):
    x = x_ref[...]                                      # (tm, D), input dtype
    xc = x.astype(wu_ref.dtype)                         # explicit compute-dtype cast
    h = jnp.dot(xc, wu_ref[...], preferred_element_type=jnp.float32,
                precision=precision)
    h = jnp.maximum(h + bu_ref[...], 0.0)               # bias add (f32) + ReLU
    y = jnp.dot(h.astype(wd_ref.dtype), wd_ref[...],
                preferred_element_type=jnp.float32, precision=precision)
    y = y + bd_ref[...]
    # TODO(synk): nn.Dropout is identity in eval mode; train-mode dropout omitted.
    # Residual add in f32 (layernorm=None, resiual=True branch of the module).
    out_ref[...] = (y + x.astype(jnp.float32)).astype(out_ref.dtype)


def hfpa_pack_params(w_up, b_up, w_down, b_down, *, compute_dtype=jnp.bfloat16):
    """One-time weight prep (hoisted out of the forward pass).

    w_up: (H, Dh, Ah); b_up: (H, Ah); w_down: (H, Ah, Dh); b_down: (H, Dh).
    Weights are stored already-transposed for x @ W (i.e. torch Linear.weight.T).
    Per-head adapter width is zero-padded so the packed width is a multiple of
    128 lanes, then per-head Linears are packed block-diagonally so each
    projection is a single wide MXU matmul (zero off-diagonal blocks guarantee
    no cross-head mixing; padded columns ReLU to 0 and contribute nothing).
    """
    H, Dh, Ah = w_up.shape
    Ah_pad = _round_up(Ah, 128 // math.gcd(H, 128))     # makes H*Ah_pad % 128 == 0
    if Ah_pad != Ah:
        w_up = jnp.pad(w_up, ((0, 0), (0, 0), (0, Ah_pad - Ah)))
        b_up = jnp.pad(b_up, ((0, 0), (0, Ah_pad - Ah)))
        w_down = jnp.pad(w_down, ((0, 0), (0, Ah_pad - Ah), (0, 0)))
    A_pad = H * Ah_pad
    D = H * Dh
    wu_bd = jax.scipy.linalg.block_diag(*w_up).astype(compute_dtype)    # (D, A_pad)
    wd_bd = jax.scipy.linalg.block_diag(*w_down).astype(compute_dtype)  # (A_pad, D)
    bu = b_up.reshape(1, A_pad).astype(jnp.float32)
    bd = b_down.reshape(1, D).astype(jnp.float32)
    return wu_bd, bu, wd_bd, bd


def hfpa_forward(x, packed, *, tm=1024, precision=None):
    """x: (B, S, D) activations (f32 or bf16); packed = hfpa_pack_params(...).

    Pass precision=jax.lax.Precision.HIGHEST if exact-f32 matmuls matter; with
    the default the f32 path uses the TPU's default MXU precision.
    """
    wu_bd, bu, wd_bd, bd = packed
    B, S, D = x.shape
    assert wu_bd.shape[0] == D and wd_bd.shape[1] == D
    A = wu_bd.shape[1]
    M = B * S

    # Sublane-aligned row tile.  Clamp to ~ceil(M/2) so the grid has >= 2 steps
    # whenever M > 8: the "parallel" row axis then shards across both
    # TensorCores on v7x (harmless ~0.35us extra step on v5e/v6e).
    tm_eff = max(8, min(_round_up(tm, 8), _round_up(pl.cdiv(M, 2), 8)))
    grid = pl.cdiv(M, tm_eff)

    # No host-side pad / trailing slice: the last tile may be partially OOB.
    # Safe only because the computation is strictly row-wise independent and
    # OOB output rows are masked on store -- do not add cross-row reductions.
    x2 = x.reshape(M, D)

    # VMEM budget: double-buffered x/out tiles + resident packed weights +
    # in-kernel f32 intermediates.  Only raise the scoped-VMEM limit when a
    # tile sweep pushes past the conservative 16 MiB default (v5e); cap well
    # under v7x's 64 MiB physical VMEM.
    act_itemsize = x.dtype.itemsize
    w_itemsize = wu_bd.dtype.itemsize
    vmem_est = 2 * (2 * tm_eff * D * act_itemsize
                    + (wu_bd.size + wd_bd.size) * w_itemsize
                    + (bu.size + bd.size) * 4)
    vmem_est += tm_eff * (A + 2 * D) * 4
    vmem_limit = None
    if vmem_est > (14 << 20):
        vmem_limit = int(min(_round_up(int(vmem_est * 3 // 2), 1 << 20), 48 << 20))

    rows_computed = grid * tm_eff
    bytes_io = (2 * M * D * act_itemsize
                + (wu_bd.size + wd_bd.size) * w_itemsize
                + (bu.size + bd.size) * 4)

    out = pl.pallas_call(
        functools.partial(hfpa_kernel, precision=precision),
        out_shape=jax.ShapeDtypeStruct((M, D), x.dtype),
        grid_spec=pl.GridSpec(
            grid=(grid,),
            in_specs=[
                pl.BlockSpec((tm_eff, D), lambda i: (i, 0)),  # x rows (contiguous)
                pl.BlockSpec((D, A), lambda i: (0, 0)),       # block-diag Wup (resident)
                pl.BlockSpec((1, A), lambda i: (0, 0)),       # bup
                pl.BlockSpec((A, D), lambda i: (0, 0)),       # block-diag Wdown (resident)
                pl.BlockSpec((1, D), lambda i: (0, 0)),       # bdown
            ],
            out_specs=pl.BlockSpec((tm_eff, D), lambda i: (i, 0)),
        ),
        compiler_params=pltpu.CompilerParams(
            dimension_semantics=("parallel",),
            vmem_limit_bytes=vmem_limit),
        cost_estimate=pl.CostEstimate(
            flops=4 * rows_computed * D * A,    # both block-diagonal matmuls
            transcendentals=0,
            bytes_accessed=bytes_io),
    )(x2, wu_bd, bu, wd_bd, bd)

    return out.reshape(B, S, D)


def hfpa_reference(x, w_up, b_up, w_down, b_down):
    """Pure-JAX reference mirroring the PyTorch forward (eval mode)."""
    B, S, D = x.shape
    H, Dh, Ah = w_up.shape
    xh = x.reshape(B, S, H, Dh)
    h = jnp.maximum(jnp.einsum("bshd,hda->bsha", xh, w_up) + b_up[None, None], 0.0)
    y = jnp.einsum("bsha,had->bshd", h, w_down) + b_down[None, None]
    return y.reshape(B, S, D) + x


if __name__ == "__main__":
    # Module config: input_size=256, adapter_heads=2, adapter_heads_size=32
    #   -> d_model_heads_size (Dh) = 128, Ah = 32
    H, Dh, Ah = 2, 128, 32
    D = H * Dh

    key = jax.random.PRNGKey(0)
    kx, ku, kbu, kd, kbd, kx2 = jax.random.split(key, 6)

    # Per-head Linear weights, stored already-transposed for x @ W.
    w_up = jax.random.normal(ku, (H, Dh, Ah), dtype=jnp.float32) * 0.05
    b_up = jax.random.normal(kbu, (H, Ah), dtype=jnp.float32) * 0.05
    w_down = jax.random.normal(kd, (H, Ah, Dh), dtype=jnp.float32) * 0.05
    b_down = jax.random.normal(kbd, (H, Dh), dtype=jnp.float32) * 0.05

    # One-time weight packing (hoisted out of the forward pass).
    packed_f32 = hfpa_pack_params(w_up, b_up, w_down, b_down,
                                  compute_dtype=jnp.float32)
    packed_bf16 = hfpa_pack_params(w_up, b_up, w_down, b_down,
                                   compute_dtype=jnp.bfloat16)

    # --- small case (B=2, S=8): default tm clamps to 8 rows -> 2 grid steps ---
    B, S = 2, 8
    x = jax.random.normal(kx, (B, S, D), dtype=jnp.float32)
    ref = hfpa_reference(x, w_up, b_up, w_down, b_down)

    out_f32 = jax.block_until_ready(hfpa_forward(x, packed_f32))
    assert out_f32.shape == (B, S, D)
    assert jnp.allclose(out_f32, ref, atol=1e-4, rtol=1e-4), "f32 mismatch"

    out_bf16 = jax.block_until_ready(hfpa_forward(x, packed_bf16))
    assert jnp.allclose(out_bf16, ref, atol=2e-2, rtol=2e-2), "bf16 mismatch"

    # --- ragged, multi-tile case (M=200): partial OOB last tile, no host pad ---
    B2, S2 = 2, 100
    x2 = jax.random.normal(kx2, (B2, S2, D), dtype=jnp.float32)
    ref2 = hfpa_reference(x2, w_up, b_up, w_down, b_down)

    out2 = jax.block_until_ready(hfpa_forward(x2, packed_f32, tm=64))  # grid=4, tail=8 rows
    assert out2.shape == (B2, S2, D)
    assert jnp.allclose(out2, ref2, atol=1e-4, rtol=1e-4), "ragged (tm=64) mismatch"

    out3 = jax.block_until_ready(hfpa_forward(x2, packed_f32))         # default tm, grid=2
    assert jnp.allclose(out3, ref2, atol=1e-4, rtol=1e-4), "ragged (default tm) mismatch"

    # --- bf16 activation streaming (halves HBM traffic on this mem-bound op) ---
    out4 = jax.block_until_ready(hfpa_forward(x2.astype(jnp.bfloat16), packed_bf16))
    assert out4.dtype == jnp.bfloat16
    assert jnp.allclose(out4.astype(jnp.float32), ref2, atol=5e-2, rtol=5e-2), \
        "bf16-activation mismatch"

    print("KERNEL_OK")
</pallas_src>

<mosaic_0001>
module attributes {stable_mosaic.version = 11 : i64} {
  func.func @hfpa_kernel(%arg0: i32, %arg1: memref<8x256xf32, #tpu.memory_space<vmem>>, %arg2: memref<256x128xf32, #tpu.memory_space<vmem>>, %arg3: memref<1x128xf32, #tpu.memory_space<vmem>>, %arg4: memref<128x256xf32, #tpu.memory_space<vmem>>, %arg5: memref<1x256xf32, #tpu.memory_space<vmem>>, %arg6: memref<8x256xf32, #tpu.memory_space<vmem>>) attributes {dimension_semantics = [#tpu.dimension_semantics<parallel>], iteration_bounds = array<i64: 2>, scalar_prefetch = 0 : i64, scratch_operands = 0 : i64, tpu.core_type = #tpu.core_type<tc>, window_params = [{transform_indices = @transform_0, window_bounds = array<i64: 8, 256>}, {pipeline_mode = #tpu.pipeline_mode<synchronous>, transform_indices = @transform_1, window_bounds = array<i64: 256, 128>}, {pipeline_mode = #tpu.pipeline_mode<synchronous>, transform_indices = @transform_2, window_bounds = array<i64: 1, 128>}, {pipeline_mode = #tpu.pipeline_mode<synchronous>, transform_indices = @transform_3, window_bounds = array<i64: 128, 256>}, {pipeline_mode = #tpu.pipeline_mode<synchronous>, transform_indices = @transform_4, window_bounds = array<i64: 1, 256>}, {transform_indices = @transform_5, window_bounds = array<i64: 8, 256>}]} {
    %c0 = arith.constant 0 : index
    %c0_0 = arith.constant 0 : index
    %0 = vector.load %arg1[%c0, %c0_0] : memref<8x256xf32, #tpu.memory_space<vmem>>, vector<8x256xf32>
    %c0_1 = arith.constant 0 : index
    %c0_2 = arith.constant 0 : index
    %1 = vector.load %arg2[%c0_1, %c0_2] : memref<256x128xf32, #tpu.memory_space<vmem>>, vector<256x128xf32>
    %cst = arith.constant dense<0.000000e+00> : vector<8x128xf32>
    %2 = tpu.matmul %0, %1, %cst {dimension_numbers = #tpu.dot_dimension_numbers<[1], [0], [0], [1], [0, 0, 1, 1], [], []>} : vector<8x256xf32>, vector<256x128xf32>, vector<8x128xf32> -> vector<8x128xf32>
    %c0_3 = arith.constant 0 : index
    %c0_4 = arith.constant 0 : index
    %3 = vector.load %arg3[%c0_3, %c0_4] : memref<1x128xf32, #tpu.memory_space<vmem>>, vector<1x128xf32>
    %4 = vector.broadcast %3 : vector<1x128xf32> to vector<8x128xf32>
    %5 = arith.addf %2, %4 : vector<8x128xf32>
    %cst_5 = arith.constant 0.000000e+00 : f32
    %6 = vector.broadcast %cst_5 : f32 to vector<8x128xf32>
    %7 = arith.maximumf %5, %6 : vector<8x128xf32>
    %c0_6 = arith.constant 0 : index
    %c0_7 = arith.constant 0 : index
    %8 = vector.load %arg4[%c0_6, %c0_7] : memref<128x256xf32, #tpu.memory_space<vmem>>, vector<128x256xf32>
    %cst_8 = arith.constant dense<0.000000e+00> : vector<8x256xf32>
    %9 = tpu.matmul %7, %8, %cst_8 {dimension_numbers = #tpu.dot_dimension_numbers<[1], [0], [0], [1], [0, 0, 1, 1], [], []>} : vector<8x128xf32>, vector<128x256xf32>, vector<8x256xf32> -> vector<8x256xf32>
    %c0_9 = arith.constant 0 : index
    %c0_10 = arith.constant 0 : index
    %10 = vector.load %arg5[%c0_9, %c0_10] : memref<1x256xf32, #tpu.memory_space<vmem>>, vector<1x256xf32>
    %11 = vector.broadcast %10 : vector<1x256xf32> to vector<8x256xf32>
    %12 = arith.addf %9, %11 : vector<8x256xf32>
    %13 = arith.addf %12, %0 : vector<8x256xf32>
    %c0_11 = arith.constant 0 : index
    %c0_12 = arith.constant 0 : index
    %14 = vector.load %arg6[%c0_11, %c0_12] : memref<8x256xf32, #tpu.memory_space<vmem>>, vector<8x256xf32>
    tpu.vector_store %arg6[%c0_11, %c0_12], %13 {strides = array<i32>} : memref<8x256xf32, #tpu.memory_space<vmem>>, vector<8x256xf32>,
    return
  }
  func.func @transform_0(%arg0: i32) -> (i32, i32) {
    %c0_i32 = arith.constant 0 : i32
    %c0_i32_0 = arith.constant 0 : i32
    return %arg0, %c0_i32 : i32, i32
  }
  func.func @transform_1(%arg0: i32) -> (i32, i32) {
    %c0_i32 = arith.constant 0 : i32
    %c0_i32_0 = arith.constant 0 : i32
    %c0_i32_1 = arith.constant 0 : i32
    return %c0_i32, %c0_i32_0 : i32, i32
  }
  func.func @transform_2(%arg0: i32) -> (i32, i32) {
    %c0_i32 = arith.constant 0 : i32
    %c0_i32_0 = arith.constant 0 : i32
    %c0_i32_1 = arith.constant 0 : i32
    return %c0_i32, %c0_i32_0 : i32, i32
  }
  func.func @transform_3(%arg0: i32) -> (i32, i32) {
    %c0_i32 = arith.constant 0 : i32
    %c0_i32_0 = arith.constant 0 : i32
    %c0_i32_1 = arith.constant 0 : i32
    return %c0_i32, %c0_i32_0 : i32, i32
  }
  func.func @transform_4(%arg0: i32) -> (i32, i32) {
    %c0_i32 = arith.constant 0 : i32
    %c0_i32_0 = arith.constant 0 : i32
    %c0_i32_1 = arith.constant 0 : i32
    return %c0_i32, %c0_i32_0 : i32, i32
  }
  func.func @transform_5(%arg0: i32) -> (i32, i32) {
    %c0_i32 = arith.constant 0 : i32
    %c0_i32_0 = arith.constant 0 : i32
    return %arg0, %c0_i32 : i32, i32
  }
}

</mosaic_0001>

<bundles_post_ra>
// kernel: tpu_custom_call.1
= control target key start
LH: loop header
LB: loop body
LE: loop exit
PB: predicated region body
PF: predicated region fallthrough
CT: control target
= control target key end

     0   :  { %10 = vsyncpa [#allocation3], 0  ;;  %s1241_s0 = inlined_call_operand.hbm [shape: f32[16,256], index: 0, kind: input, shape index: {}]   ;;  %s1242_s1 = inlined_call_operand.hbm [shape: f32[256,128], index: 1, kind: input, shape index: {}]   ;;  %s1243_s2 = inlined_call_operand.vmem [shape: f32[1,128], index: 2, kind: input, shape index: {}]   ;;  %s1244_s3 = inlined_call_operand.hbm [shape: f32[128,256], index: 3, kind: input, shape index: {}]   ;;  %s1245_s4 = inlined_call_operand.vmem [shape: f32[1,256], index: 4, kind: input, shape index: {}]   ;;  %s1246_s5 = inlined_call_operand.hbm [shape: f32[16,256], index: 5, kind: output, shape index: {}]  }
   0x1   :  { %12 = vsyncpa [#allocation3 + $0x1], 0 }
   0x2   :  { %13 = vsyncpa [#allocation6], 0 }
   0x3   :  { %14 = vsyncpa [#allocation4], 0 }
   0x4   :  { %16 = vsyncpa [#allocation4 + $0x1], 0  ;;  %s994_s18 = smov 0   ;;  %s996_s19 = smov 0  }
   0x5   :  { %s998_s20 = smov 0   ;;  %s1000_s21 = smov 0  }
   0x6 LB: > { %s1015_s22 = sadd.s32 4294967295, %s953_s21   ;;  %s605_s23 = sadd.s32 4294967294, %s953_s21   ;;  %s953_s21 = sphi %s1000_s21, %s1266_s21   ;;  %s949_s20 = sphi %s998_s20, %s1265_s20   ;;  %s945_s19 = sphi %s996_s19, %s1264_s19   ;;  %s941_s18 = sphi %s994_s18, %s1263_s18  }
   0x7   : > { %p42_p0 = scmp.ne.s32.totalorder %s945_s19, %s941_s18  ;;  %p1247_p1 = scmp.eq.s32.totalorder %s1015_s22, 0 }
   0x8   : > { %p156_p3 = scmp.eq.s32.totalorder %s605_s23, 1  ;;  %p606_p5 = scmp.ge.s32.totalorder %s953_s21, 1 }
   0x9   : > { %p1024_p4 = por %p1247_p1, %p42_p0  ;;  %p163_p7 = scmp.lt.s32.totalorder %s953_s21, 3 }
   0xa   : > { %p1029_p6 = por %p156_p3, %p42_p0  ;;  %s955_s27 = smov [#allocation5]  }
   0xb   : > { %s1250_s24 = scalar_select %p1024_p4, 1, 0 }
   0xc   : > { %s1251_s25 = scalar_select %p1029_p6, 1, 0 }
   0xd   : > { %p1034_p8 = pnand %p606_p5, %p163_p7  ;;  %s175_s28 = sshll.u32 %s955_s27, 4  ;;  %s1038_s28 = int_to_ptr.vmem [resolvable:$true] %s175_s28 }
   0xe   : > { %s956_s30 = smov [#allocation7]   ;;  %s797_s9 = scalar_lea.hbm %s1242_s1, 4096 }
   0xf   : > { %p737_p9 = pneg %p1034_p8  ;;  %s191_s6 = sshll.u32 %s956_s30, 4  ;;  %s1049_s6 = int_to_ptr.vmem [resolvable:$true] %s191_s6 }
  0x10   : > { %p798_p12 = scmp.ne.s32.totalorder %s1242_s1, %s797_s9  ;;  %p804_p5 = scmp.lt.u32.totalorder %s797_s9, %s1242_s1 }
  0x11   : > { %p1045_p11 = pnand %p737_p9, %p1247_p1 }
  0x13   : > { %p799_p13 = pneg %p1045_p11 }
  0x15   : > { %p800_p0 = pnand %p799_p13, %p798_p12 }
  0x17   : > { %p801_p3 = pneg %p800_p0 }
  0x19   : > { %p806_p7 = pnand %p804_p5, %p801_p3 }
  0x1b   : > { %809 = shalt.err (!%p806_p7)
}
  0x1c   : > { %s810_s14 = scalar_lea.vmem %s1038_s28, 4096  ;;  %p818_p2 = scmp.lt.s32.totalorder %s1038_s28, %s1038_s28 }
  0x1d   : > { %p811_p9 = scmp.ne.s32.totalorder %s1038_s28, %s810_s14  ;;  %p819_p12 = scmp.lt.s32.totalorder %s810_s14, %s810_s14 }
  0x1f   : > { %p813_p10 = pnand %p811_p9, %p799_p13  ;;  %p820_p0 = por %p819_p12, %p818_p2 }
  0x21   : > { %p814_p1 = pneg %p813_p10 }
  0x23   : > { %p821_p6 = pnand %p820_p0, %p814_p1 }
  0x25   : > { %824 = shalt.err (!%p821_p6)
}
  0x26   : > { %s957_s15 = smov 128   ;;  %s958_s16 = smov 8  }
  0x27   : > { %740 = dma.hbm_to_vmem [thread:$0]  (!%p1045_p11), %s1242_s1, 4096, %s1038_s28, [#allocation6], %s957_s15, %s957_s15, %s958_s16  }
  0x28   : > { %s825_s7 = scalar_lea.hbm %s1244_s3, 4096 }
  0x29   : > { %p826_p2 = scmp.ne.s32.totalorder %s1244_s3, %s825_s7  ;;  %p832_p10 = scmp.lt.u32.totalorder %s825_s7, %s1244_s3 }
  0x2b   : > { %p828_p1 = pnand %p826_p2, %p799_p13 }
  0x2d   : > { %p829_p6 = pneg %p828_p1 }
  0x2f   : > { %p834_p3 = pnand %p832_p10, %p829_p6 }
  0x31   : > { %837 = shalt.err (!%p834_p3)
}
  0x32   : > { %s838_s28 = scalar_lea.vmem %s1049_s6, 4096  ;;  %p846_p12 = scmp.lt.s32.totalorder %s1049_s6, %s1049_s6 }
  0x33   : > { %p839_p5 = scmp.ne.s32.totalorder %s1049_s6, %s838_s28  ;;  %p847_p0 = scmp.lt.s32.totalorder %s838_s28, %s838_s28 }
  0x35   : > { %p841_p7 = pnand %p839_p5, %p799_p13  ;;  %p848_p2 = por %p847_p0, %p846_p12 }
  0x37   : > { %p842_p9 = pneg %p841_p7 }
  0x39   : > { %p849_p1 = pnand %p848_p2, %p842_p9 }
  0x3b   : > { %852 = shalt.err (!%p849_p1)
}
  0x3c   : > { %s959_s12 = smov 256   ;;  %s960_s13 = smov 16  }
  0x3d   : > { %743 = dma.hbm_to_vmem [thread:$0]  (!%p1045_p11), %s1244_s3, 4096, %s1049_s6, [#allocation6], %s959_s12, %s959_s12, %s960_s13  }
  0x3e   : > { %s1104_s16 = sadd.s32 1, %s953_s21   ;;  %s29_s23 = sadd.s32 1, %s949_s20 }
  0x3f   : > { %s26_s17 = ssub.s32 %s953_s21, %s1104_s16  ;;  %p36_p6 = scmp.ne.s32.totalorder %s949_s20, %s945_s19 }
  0x40   : > { %p27_p13 = scmp.eq.s32.totalorder %s26_s17, 0  ;;  %p37_p10 = scmp.eq.s32.totalorder %s953_s21, 0 }
  0x41   : > { %p1254_p5 = scmp.eq.s32.totalorder %s1015_s22, 1  ;;  %p754_p9 = scmp.lt.s32.totalorder %s953_s21, 2 }
  0x42   : > { %s1113_s27 = scalar_select %p27_p13, %s949_s20, %s29_s23  }
  0x43   : > { %p38_p3 = por %p37_p10, %p36_p6  ;;  %p1117_p7 = por %p1254_p5, %p36_p6 }
  0x44   : > { %s208_s29 = sand.u32 1, %s949_s20   ;;  %s624_s6 = sshll.u32 %s953_s21, 8 }
  0x45   : > { %s1255_s30 = scalar_select %p1117_p7, 1, 0 }
  0x46   : > { %s610_s7 = sshll.u32 %s208_s29, 4  ;;  %s1127_s10 = scalar_lea.hbm %s1241_s0, %s624_s6 }
  0x47   : > { %s212_s11 = scalar_lea.vmem [#allocation2], %s610_s7  ;;  %p1131_p11 = pnand %p754_p9, %p38_p3 }
  0x48   : > { %s220_s28 = sshll.u32 %s212_s11, 4  ;;  %s209_s13 = scalar_lea.sflag [#allocation3], %s208_s29  ;;  %s1129_s28 = int_to_ptr.vmem [resolvable:$true] %s220_s28 }
  0x49   : > { %s853_s14 = scalar_lea.hbm %s1127_s10, 256  ;;  %p855_p0 = pneg %p1131_p11 }
  0x4a   : > { %p854_p12 = scmp.ne.s32.totalorder %s1127_s10, %s853_s14  ;;  %s858_s23 = scalar_lea.hbm %s1241_s0, 512 }
  0x4b   : > { %p859_p13 = scmp.lt.u32.totalorder %s1127_s10, %s1241_s0  ;;  %p860_p6 = scmp.lt.u32.totalorder %s858_s23, %s853_s14 }
  0x4c   : > { %p856_p2 = pnand %p855_p0, %p854_p12  ;;  %p862_p3 = scmp.lt.u32.totalorder %s853_s14, %s1127_s10 }
  0x4d   : > { %p861_p10 = por %p860_p6, %p859_p13 }
  0x4e   : > { %p857_p1 = pneg %p856_p2 }
  0x4f   : > { %p863_p5 = por %p862_p3, %p861_p10 }
  0x51   : > { %p864_p9 = pnand %p863_p5, %p857_p1 }
  0x53   : > { %867 = shalt.err (!%p864_p9)
}
  0x54   : > { %s868_s29 = scalar_lea.vmem %s1129_s28, 256  ;;  %s961_s8 = smov [#allocation2]  }
  0x55   : > { %p869_p12 = scmp.ne.s32.totalorder %s1129_s28, %s868_s29  ;;  %s873_s9 = sshll.u32 %s961_s8, 4  ;;  %s874_s9 = int_to_ptr.vmem [resolvable:$false] %s873_s9 }
  0x56   : > { %s875_s11 = scalar_lea.vmem %s874_s9, 512  ;;  %p876_p4 = scmp.lt.s32.totalorder %s1129_s28, %s874_s9 }
  0x57   : > { %p871_p2 = pnand %p869_p12, %p855_p0  ;;  %p877_p13 = scmp.lt.s32.totalorder %s875_s11, %s868_s29 }
  0x59   : > { %p872_p7 = pneg %p871_p2  ;;  %p878_p6 = por %p877_p13, %p876_p4 }
  0x5b   : > { %p879_p10 = pnand %p878_p6, %p872_p7 }
  0x5d   : > { %882 = shalt.err (!%p879_p10)
}
  0x5e   : > { %747 = dma.hbm_to_vmem [thread:$0]  (!%p1131_p11), %s1127_s10, 256, %s1129_s28, %s209_s13  }
  0x5f   : > { %229 = sbr.rel (%p1034_p8) target bundleno = 591 (0x24f), region = 40  ;;  %s1163_s14 = sand.u32 (!%p1034_p8), 1, %s945_s19  }
  0x60   : > { %s614_s15 = sshll.u32 (!%p1034_p8), %s1163_s14, 4  ;;  %s232_s17 = scalar_lea.sflag (!%p1034_p8), [#allocation3], %s1163_s14 }
  0x61   : > { %s1169_s23 = scalar_lea.vmem (!%p1034_p8), [#allocation2], %s614_s15  ;;  %p1257_p4 = scmp.ne.s32.totalorder (!%p1034_p8), %s1250_s24, 0 }
  0x66   : > { %928 = dma.done.wait (%p1257_p4), %s232_s17, 256  }
  0x67   : > { %930 = vsyncadd (%p1257_p4), %s232_s17, 4294967040  ;;  %p1258_p7 = scmp.eq.s32.totalorder %s1015_s22, 0 }
  0x69   : > { %932 = dma.done.wait (%p1258_p7), [#allocation6], 8192   ;;  %p1259_p8 = pmov %p1258_p7 }
  0x6a   : > { %v288_v0 = vld [vmem:[#allocation5 + $0x80] sm:$0xff]  ;;  %v289_v1 = vld [vmem:[#allocation5 + $0x88] sm:$0xff]  ;;  %v290_v5 = vld [vmem:[#allocation5 + $0x90] sm:$0xff]  ;;  %s625_s12 = sshll.u32 %s1015_s22, 8  ;;  %s269_s13 = scalar_lea.vmem [#allocation8], %s614_s15 }
  0x6b   : > { %934 = vsyncadd (%p1259_p8), [#allocation6], 4294959104  ;;  %v272_v2 = vld [vmem:[#allocation5] sm:$0xff]  ;;  %v661_v3 = vpack.c.bf16 %v289_v1, %v288_v0  ;;  %v273_v4 = vld [vmem:[#allocation5 + $0x8] sm:$0xff]  ;;  %s516_s7 = sshll.u32 %s269_s13, 4  ;;  %s1197_s8 = scalar_lea.hbm %s1246_s5, %s625_s12  ;;  %s1199_s7 = int_to_ptr.vmem [resolvable:$true] %s516_s7 }
  0x6c   : > { %v291_v6 = vld [vmem:[#allocation5 + $0x98] sm:$0xff]  ;;  %v663_v7 = vpack.c.bf16 %v273_v4, %v272_v2  ;;  %v274_v9 = vld [vmem:[#allocation5 + $0x10] sm:$0xff]  ;;  %v292_v11 = vld [vmem:[#allocation5 + $0xa0] sm:$0xff]  ;;  %s502_s22 = scalar_lea.sflag [#allocation4], %s1163_s14  ;;  %s883_s9 = scalar_lea.vmem %s1199_s7, 256 }
  0x6d   : > { %v665_v8 = vpack.c.bf16 %v291_v6, %v290_v5  ;;  %v275_v10 = vld [vmem:[#allocation5 + $0x18] sm:$0xff]  ;;  %662 = vmatprep.subr.bf16.mxu0 %v661_v3  ;;  %v293_v12 = vld [vmem:[#allocation5 + $0xa8] sm:$0xff]  ;;  %v276_v15 = vld [vmem:[#allocation5 + $0x20] sm:$0xff]  ;;  %p884_p11 = scmp.ne.s32.totalorder %s1199_s7, %s883_s9  ;;  %p1260_p0 = scmp.ne.s32.totalorder %s1255_s30, 0 }
  0x6e   : > { %664 = vmatpush3.bf16.msra.mxu0 %v663_v7  ;;  %v667_v13 = vpack.c.bf16 %v275_v10, %v274_v9  ;;  %v669_v14 = vpack.c.bf16 %v293_v12, %v292_v11  ;;  %v277_v16 = vld [vmem:[#allocation5 + $0x28] sm:$0xff]  ;;  %v294_v17 = vld [vmem:[#allocation5 + $0xb0] sm:$0xff]  ;;  %v295_v18 = vld [vmem:[#allocation5 + $0xb8] sm:$0xff]  ;;  %s963_s11 = smov [#allocation8]  }
  0x6f   : > { %666 = vmatprep.subr.bf16.mxu0 %v665_v8  ;;  %v671_v19 = vpack.c.bf16 %v277_v16, %v276_v15  ;;  %v673_v20 = vpack.c.bf16 %v295_v18, %v294_v17  ;;  %v278_v21 = vld [vmem:[#allocation5 + $0x30] sm:$0xff]  ;;  %v279_v22 = vld [vmem:[#allocation5 + $0x38] sm:$0xff]  ;;  %v296_v23 = vld [vmem:[#allocation5 + $0xc0] sm:$0xff]  ;;  %p885_p1 = pnand %p884_p11, %p1260_p0  ;;  %s887_s15 = sshll.u32 %s963_s11, 4  ;;  %s888_s15 = int_to_ptr.vmem [resolvable:$false] %s887_s15 }
  0x70   : > { %v297_v24 = vld [vmem:[#allocation5 + $0xc8] sm:$0xff]  ;;  %v280_v26 = vld [vmem:[#allocation5 + $0x40] sm:$0xff]  ;;  %v385_v29 = vld [vmem:[#allocation7 + $0x18] sm:$0xff]  ;;  %v675_v30 = vpack.c.bf16 %v279_v22, %v278_v21  ;;  %s889_s17 = scalar_lea.vmem %s888_s15, 512  ;;  %p890_p5 = scmp.lt.s32.totalorder %s1199_s7, %s888_s15 }
  0x71   : > { %v1180_v25 = vld [vmem:[%s1169_s23 + $0x8] sm:$0xff]  ;;  %v298_v31 = vld [vmem:[#allocation5 + $0xd0] sm:$0xff]  ;;  %v382_v33 = vld [vmem:[#allocation7] sm:$0xff]  ;;  %v677_v36 = vpack.c.bf16 %v297_v24, %v296_v23  ;;  %p886_p3 = pneg %p885_p1  ;;  %p891_p9 = scmp.lt.s32.totalorder %s889_s17, %s883_s9 }
  0x72   : > { %668 = vmatpush3.bf16.msra.mxu0 %v667_v13  ;;  %v281_v27 = vld [vmem:[#allocation5 + $0x48] sm:$0xff]  ;;  %375 = vmatprep.mubr.f32.mxu0 %v1180_v25  ;;  %v384_v34 = vld [vmem:[#allocation7 + $0x10] sm:$0xff]  ;;  %v389_v38 = vld [vmem:[#allocation7 + $0x38] sm:$0xff] }
  0x73   : > { %670 = vmatprep.subr.bf16.mxu0 %v669_v14  ;;  %v383_v28 = vld [vmem:[#allocation7 + $0x8] sm:$0xff]  ;;  %v695_v37 = vpack.c.bf16 %v384_v34, %v382_v33  ;;  %v386_v39 = vld [vmem:[#allocation7 + $0x20] sm:$0xff]  ;;  %v388_v40 = vld [vmem:[#allocation7 + $0x30] sm:$0xff]  ;;  %v679_v46 = vpack.c.bf16 %v281_v27, %v280_v26  ;;  %p892_p12 = por %p891_p9, %p890_p5 }
  0x74   : > { %v693_v32 = vpack.c.bf16 %v385_v29, %v383_v28  ;;  %v387_v35 = vld [vmem:[#allocation7 + $0x28] sm:$0xff]  ;;  %v299_v41 = vld [vmem:[#allocation5 + $0xd8] sm:$0xff]  ;;  %v699_v45 = vpack.c.bf16 %v388_v40, %v386_v39  ;;  %v282_v47 = vld [vmem:[#allocation5 + $0x50] sm:$0xff] }
  0x75   : > { %v697_v42 = vpack.c.bf16 %v389_v38, %v387_v35  ;;  %v391_v43 = vld [vmem:[#allocation7 + $0x48] sm:$0xff]  ;;  %v393_v44 = vld [vmem:[#allocation7 + $0x58] sm:$0xff]  ;;  %v390_v49 = vld [vmem:[#allocation7 + $0x40] sm:$0xff]  ;;  %v681_v51 = vpack.c.bf16 %v299_v41, %v298_v31  ;;  %v962_v35 = vmov 0.0   ;;  %p893_p2 = pnand %p892_p12, %p886_p3 }
  0x76   : > { %672 = vmatpush3.bf16.msra.mxu0 %v671_v19  ;;  %694 = vmatprep.subr.bf16.mxu1 %v693_v32  ;;  %v701_v48 = vpack.c.bf16 %v393_v44, %v391_v43  ;;  %v392_v50 = vld [vmem:[#allocation7 + $0x50] sm:$0xff]  ;;  %v283_v52 = vld [vmem:[#allocation5 + $0x58] sm:$0xff]  ;;  %v395_v53 = vld [vmem:[#allocation7 + $0x68] sm:$0xff] }
  0x77   : > { %674 = vmatprep.subr.bf16.mxu0 %v673_v20  ;;  %696 = vmatpush1.bf16.msra.mxu1 %v695_v37  ;;  %v397_v54 = vld [vmem:[#allocation7 + $0x78] sm:$0xff]  ;;  %v300_v55 = vld [vmem:[#allocation5 + $0xe0] sm:$0xff]  ;;  %v301_v56 = vld [vmem:[#allocation5 + $0xe8] sm:$0xff]  ;;  %v703_v57 = vpack.c.bf16 %v392_v50, %v390_v49  ;;  %v683_v58 = vpack.c.bf16 %v283_v52, %v282_v47 }
  0x78   : > { %698 = vmatprep.subr.bf16.mxu1 %v697_v42  ;;  %v284_v59 = vld [vmem:[#allocation5 + $0x60] sm:$0xff]  ;;  %v705_v60 = vpack.c.bf16 %v397_v54, %v395_v53  ;;  %v396_v62 = vld [vmem:[#allocation7 + $0x70] sm:$0xff]  ;;  %v685_v63 = vpack.c.bf16 %v301_v56, %v300_v55  ;;  %v285_v0 = vld [vmem:[#allocation5 + $0x68] sm:$0xff]  ;;  %490 = vmatprep.mubr.f32.mxu1 %v962_v35  ;;  %v416_v42 = vlaneseq }
  0x79   : > { %v394_v61 = vld [vmem:[#allocation7 + $0x60] sm:$0xff]  ;;  %v399_v1 = vld [vmem:[#allocation7 + $0x88] sm:$0xff]  ;;  %v401_v2 = vld [vmem:[#allocation7 + $0x98] sm:$0xff]  ;;  %v687_v6 = vpack.c.bf16 %v285_v0, %v284_v59 }
  0x7a   : > { %676 = vmatpush3.bf16.msra.mxu0 %v675_v30  ;;  %v302_v3 = vld [vmem:[#allocation5 + $0xf0] sm:$0xff]  ;;  %v303_v4 = vld [vmem:[#allocation5 + $0xf8] sm:$0xff]  ;;  %v707_v5 = vpack.c.bf16 %v396_v62, %v394_v61  ;;  %v709_v8 = vpack.c.bf16 %v401_v2, %v399_v1  ;;  %v398_v9 = vld [vmem:[#allocation7 + $0x80] sm:$0xff]  ;;  %v417_v43 = vshrl.u32 %v416_v42, 7 }
  0x7b   : > { %678 = vmatprep.subr.bf16.mxu0 %v677_v36  ;;  %700 = vmatpush1.bf16.msra.mxu1 %v699_v45  ;;  %v286_v7 = vld [vmem:[#allocation5 + $0x70] sm:$0xff]  ;;  %v689_v11 = vpack.c.bf16 %v303_v4, %v302_v3  ;;  %v287_v12 = vld [vmem:[#allocation5 + $0x78] sm:$0xff]  ;;  %v403_v13 = vld [vmem:[#allocation7 + $0xa8] sm:$0xff] }
  0x7c   : > { %702 = vmatprep.subr.bf16.mxu1 %v701_v48  ;;  %v400_v10 = vld [vmem:[#allocation7 + $0x90] sm:$0xff]  ;;  %v405_v14 = vld [vmem:[#allocation7 + $0xb8] sm:$0xff]  ;;  %v691_v16 = vpack.c.bf16 %v287_v12, %v286_v7  ;;  %v402_v18 = vld [vmem:[#allocation7 + $0xa0] sm:$0xff]  ;;  %v418_v44 = vsub.s32 0, %v417_v43 }
  0x7d   : > { %v711_v15 = vpack.c.bf16 %v400_v10, %v398_v9  ;;  %v713_v17 = vpack.c.bf16 %v405_v14, %v403_v13  ;;  %v404_v19 = vld [vmem:[#allocation7 + $0xb0] sm:$0xff]  ;;  %v407_v22 = vld [vmem:[#allocation7 + $0xc8] sm:$0xff]  ;;  %v409_v23 = vld [vmem:[#allocation7 + $0xd8] sm:$0xff] }
  0x7e   : > { %680 = vmatpush3.bf16.msra.mxu0 %v679_v46  ;;  %v715_v20 = vpack.c.bf16 %v404_v19, %v402_v18  ;;  %v270_v21 = vld [vmem:[%s1169_s23] sm:$0xff]  ;;  %v717_v24 = vpack.c.bf16 %v409_v23, %v407_v22  ;;  %v411_v29 = vld [vmem:[#allocation7 + $0xe8] sm:$0xff]  ;;  %v413_v30 = vld [vmem:[#allocation7 + $0xf8] sm:$0xff]  ;;  %v422_v46 = vsub.s32 1, %v417_v43 }
  0x7f   : > { %682 = vmatprep.subr.bf16.mxu0 %v681_v51  ;;  %704 = vmatpush1.bf16.msra.mxu1 %v703_v57  ;;  %v406_v26 = vld [vmem:[#allocation7 + $0xc0] sm:$0xff]  ;;  %v408_v27 = vld [vmem:[#allocation7 + $0xd0] sm:$0xff]  ;;  %v721_v31 = vpack.c.bf16 %v413_v30, %v411_v29 }
  0x80   : > { %706 = vmatprep.subr.bf16.mxu1 %v705_v60  ;;  %v719_v28 = vpack.c.bf16 %v408_v27, %v406_v26  ;;  %v410_v32 = vld [vmem:[#allocation7 + $0xe0] sm:$0xff]  ;;  %v412_v33 = vld [vmem:[#allocation7 + $0xf0] sm:$0xff] }
  0x81   : > { %v723_v34 = vpack.c.bf16 %v412_v33, %v410_v32  ;;  %v618_v37 = vld [vmem:[%s1243_s2] ss:$0 sm:$0xff] }
  0x82   : > { %684 = vmatpush3.bf16.msra.mxu0 %v683_v58  ;;  %v414_v45 = vld [vmem:[%s1245_s4] sm:$0x3] }
  0x83   : > { %686 = vmatprep.subr.bf16.mxu0 %v685_v63  ;;  %708 = vmatpush1.bf16.msra.mxu1 %v707_v5  ;;  %v419_v47 = vrot.slane %v414_v45, %v418_v44  ;;  %v423_v48 = vrot.slane %v414_v45, %v422_v46 }
  0x84   : > { %710 = vmatprep.subr.bf16.mxu1 %v709_v8 }
  0x86   : > { %688 = vmatpush3.bf16.msra.mxu0 %v687_v6 }
  0x87   : > { %690 = vmatprep.subr.bf16.mxu0 %v689_v11  ;;  %712 = vmatpush1.bf16.msra.mxu1 %v711_v15 }
  0x88   : > { %714 = vmatprep.subr.bf16.mxu1 %v713_v17 }
  0x8a   : > { %692 = vmatpush3.bf16.msra.mxu0 %v691_v16 }
  0x8b   : > { %716 = vmatpush1.bf16.msra.mxu1 %v715_v20 }
  0x8c   : > { %718 = vmatprep.subr.bf16.mxu1 %v717_v24 }
  0x8d   : > { %376 = vmatmul.mubr.f32.vlgmr.msra.gmra.mrb[0].mxu0 %v270_v21 }
  0x8f   : > { %720 = vmatpush1.bf16.msra.mxu1 %v719_v28 }
  0x90   : > { %722 = vmatprep.subr.bf16.mxu1 %v721_v31 }
  0x93   : > { %724 = vmatpush1.bf16.msra.mxu1 %v723_v34 }
 0x160   : > { %v658_v36 = vpop.f32.mrb[0].mxu0 }
 0x161   : > { %v659_v38 = vpop.f32.mrb[1].mxu0 }
 0x162   : > { %v660_v39 = vadd.f32 %v659_v38, %v658_v36 }
 0x164   : > { %v378_v40 = vadd.f32 %v660_v39, %v618_v37 }
 0x166   : > { %v381_v41 = vmax.f32 %v378_v40, 0.0 }
 0x168   : > { %491 = vmatmul.mubr.f32.vlgmr.msra.gmra.mrb[0].mxu1 %v381_v41 }
 0x23b   : > { %v492_v49 = vpop.f32.mrb[0].mxu1 }
 0x23c   : > { %v493_v50 = vadd.f32 %v492_v49, %v419_v47  ;;  %v494_v51 = vpop.f32.mrb[1].mxu1 }
 0x23d   : > { %v495_v52 = vadd.f32 %v494_v51, %v423_v48 }
 0x23e   : > { %v497_v53 = vadd.f32 %v493_v50, %v270_v21 }
 0x23f   : > { %v498_v54 = vadd.f32 %v495_v52, %v1180_v25 }
 0x240   : > { %499 = vst [vmem:[%s269_s13] sm:$0xff] %v497_v53 }
 0x241   : > { %500 = vst [vmem:[%s269_s13 + $0x8] sm:$0xff] %v498_v54 }
 0x242   : > { %896 = shalt.err (!%p893_p2)
}
 0x243   : > { %s897_s14 = scalar_lea.hbm %s1197_s8, 256  ;;  %s901_s26 = scalar_lea.hbm %s1246_s5, 512 }
 0x244   : > { %p898_p13 = scmp.ne.s32.totalorder %s1197_s8, %s897_s14  ;;  %p902_p4 = scmp.lt.u32.totalorder %s1197_s8, %s1246_s5 }
 0x245   : > { %p903_p7 = scmp.lt.u32.totalorder %s901_s26, %s897_s14  ;;  %p905_p11 = scmp.lt.u32.totalorder %s897_s14, %s1197_s8 }
 0x246   : > { %p899_p6 = pnand %p898_p13, %p1260_p0 }
 0x247   : > { %p904_p8 = por %p903_p7, %p902_p4 }
 0x248   : > { %p900_p10 = pneg %p899_p6 }
 0x249   : > { %p906_p1 = por %p905_p11, %p904_p8 }
 0x24b   : > { %p907_p3 = pnand %p906_p1, %p900_p10 }
 0x24d   : > { %910 = shalt.err (!%p907_p3)
}
 0x24e   : > { %735 = dma.vmem_to_hbm [thread:$0]  (%p1260_p0), %s1199_s7, 256, %s1197_s8, %s502_s22  }
 0x24f PF: > { %s528_s12 = sand.u32 1, %s941_s18   ;;  %p1261_p5 = scmp.ne.s32.totalorder %s1251_s25, 0 }
 0x250   : > { %p1262_p9 = scmp.ge.s32.totalorder %s953_s21, 2  ;;  %s529_s13 = scalar_lea.sflag [#allocation4], %s528_s12 }
 0x252   : > { %p749_p12 = pnand %p1262_p9, %p1261_p5 }
 0x254   : > { %936 = dma.done.wait (!%p749_p12), %s529_s13, 256  }
 0x255   : > { %938 = vsyncadd (!%p749_p12), %s529_s13, 4294967040  ;;  %p19_p2 = scmp.ge.s32.totalorder %s1104_s16, 4   ;;  %s1263_s18 = smov %s945_s19 }
 0x256   : > { %s1264_s19 = smov %s949_s20  ;;  %s1265_s20 = smov %s1113_s27 }
 0x257   : > { %s1266_s21 = smov %s1104_s16  ;;  %21 = sbr.rel (!%p19_p2) target bundleno = 6 (0x6), region = 93 }
 0x25e   :  { %534 = vsyncpa [#allocation3], 1 }
 0x25f   :  { %536 = vsyncpa [#allocation3 + $0x1], 1 }
 0x260   :  { %537 = vsyncpa [#allocation6], 1 }
 0x261   :  { %538 = vsyncpa [#allocation4], 1 }
 0x262   :  { %540 = vsyncpa [#allocation4 + $0x1], 1 }

</bundles_post_ra>
